<compile_context>
chip_gen: v6e
topology: v6e:2x2x1
jax: 0.10.0
libtpu: 0.0.40
codegen_flags: <defaults>
</compile_context>

<pallas_src>
import jax
import jax.numpy as jnp
from jax import lax
from jax.experimental import pallas as pl
from jax.experimental.pallas import tpu as pltpu


def _round_up(a: int, b: int) -> int:
    return ((a + b - 1) // b) * b


def _coeffs_linear_kernel(x_ref, w_ref, o_ref, acc_ref):
    """One (tm, tn) output tile, accumulated over the K grid axis.

    x_ref:   (tm, tk)  activation tile
    w_ref:   (tn, tk)  weight tile, PyTorch (out_features, in_features) layout
    o_ref:   (tm, tn)  output tile
    acc_ref: (tm, tn)  f32 VMEM accumulator (persists across the K axis)
    """
    k = pl.program_id(2)

    @pl.when(k == 0)
    def _():
        acc_ref[...] = jnp.zeros_like(acc_ref)

    # out += x @ W^T : contract the last dim of both operands so the MXU
    # consumes W in its native (N, K) layout — no transpose anywhere.
    acc_ref[...] += lax.dot_general(
        x_ref[...],
        w_ref[...],
        dimension_numbers=(((1,), (1,)), ((), ())),
        preferred_element_type=jnp.float32,
    )

    @pl.when(k == pl.num_programs(2) - 1)
    def _():
        o_ref[...] = acc_ref[...].astype(o_ref.dtype)


def _coeffs_pallas(x, weight, tm, tn, tk):
    m, k_dim = x.shape
    n = weight.shape[0]

    m_pad = _round_up(m, tm)
    n_pad = _round_up(n, tn)
    k_pad = _round_up(k_dim, tk)

    # Zero-pad only when unaligned (zeros along K contribute nothing; extra
    # M/N rows/cols are sliced off below). In production the weight would be
    # stored pre-padded at init to avoid this per-call copy.
    if (m_pad, k_pad) != (m, k_dim):
        x = jnp.pad(x, ((0, m_pad - m), (0, k_pad - k_dim)))
    if (n_pad, k_pad) != (n, k_dim):
        weight = jnp.pad(weight, ((0, n_pad - n), (0, k_pad - k_dim)))

    grid = (m_pad // tm, n_pad // tn, k_pad // tk)

    out = pl.pallas_call(
        _coeffs_linear_kernel,
        out_shape=jax.ShapeDtypeStruct((m_pad, n_pad), jnp.float32),
        grid_spec=pltpu.PrefetchScalarGridSpec(
            num_scalar_prefetch=0,
            grid=grid,
            in_specs=[
                pl.BlockSpec((tm, tk), lambda i, j, k: (i, k)),   # x tile
                pl.BlockSpec((tn, tk), lambda i, j, k: (j, k)),   # W tile (N,K)
            ],
            out_specs=pl.BlockSpec((tm, tn), lambda i, j, k: (i, j)),
            scratch_shapes=[pltpu.VMEM((tm, tn), jnp.float32)],
        ),
        compiler_params=pltpu.CompilerParams(
            dimension_semantics=("parallel", "parallel", "arbitrary"),
            vmem_limit_bytes=32 * 1024 * 1024,  # > v5e's 16 MiB default, safe on v7x
        ),
    )(x, weight)

    return out[:m, :n]


def coeffs_network_forward(x, weight, *, use_pallas=None):
    """Pallas equivalent of coeffs_network.forward.

    x:      (batch, n_combinations)  any float/int dtype (cast once to f32)
    weight: (n_features, n_combinations)  -- PyTorch nn.Linear layout
    returns (batch, n_features) float32
    """
    batch, n_comb = x.shape
    n_feat, n_comb_w = weight.shape
    assert n_comb == n_comb_w

    # x.float() semantics; single wrapper-level cast (no-op if already f32).
    x = x.astype(jnp.float32)
    weight = weight.astype(jnp.float32)

    if use_pallas is None:
        # Below ~one MXU-tile's worth of work the pallas_call is pure
        # launch/DMA overhead — let XLA emit the fused dot.
        use_pallas = (batch * n_comb * n_feat) >= (128 * 128 * 128)

    if not use_pallas:
        return lax.dot_general(
            x, weight,
            dimension_numbers=(((1,), (1,)), ((), ())),
            preferred_element_type=jnp.float32,
        )

    # Tile sizes: output lanes a multiple of 128 (lane-dense stores), K tiles
    # a multiple of 128, sublanes a multiple of 8; sized well under v7x's
    # 64 MiB VMEM even with double buffering (~3 MiB total at max tiles).
    tm = min(256, _round_up(batch, 8))
    tn = min(256, _round_up(n_feat, 128))
    tk = min(512, _round_up(n_comb, 128))

    return _coeffs_pallas(x, weight, tm, tn, tk)


def init_coeffs_network_params(n_combinations, n_features):
    """Matches the module's __init__: weight = 0 * (default nn.Linear weight)
    -> all zeros, shape (n_features, n_combinations), no bias."""
    return jnp.zeros((n_features, n_combinations), dtype=jnp.float32)


if __name__ == "__main__":
    batch = 8
    n_combinations = 32
    n_features = 16

    key = jax.random.PRNGKey(0)
    kx, kw = jax.random.split(key)
    x = jax.random.normal(kx, (batch, n_combinations), dtype=jnp.float32)

    # 1) Module-faithful zero-init weight (exact check).
    w_zero = init_coeffs_network_params(n_combinations, n_features)
    out_zero = jax.block_until_ready(
        coeffs_network_forward(x, w_zero, use_pallas=True))
    assert out_zero.shape == (batch, n_features)
    assert out_zero.dtype == jnp.float32
    assert jnp.allclose(out_zero, jnp.zeros_like(out_zero)), "zero-init mismatch"

    # 2) Non-trivial weight to exercise the matmul numerics.
    w_rand = 0.1 * jax.random.normal(
        kw, (n_features, n_combinations), dtype=jnp.float32)
    out = jax.block_until_ready(
        coeffs_network_forward(x, w_rand, use_pallas=True))
    ref = jnp.dot(x, w_rand.T, precision=lax.Precision.HIGHEST)
    assert out.shape == (batch, n_features)
    # MXU default precision decomposes f32 into bf16 passes -> loosened tol.
    assert jnp.allclose(out, ref, rtol=2e-2, atol=2e-2), "mismatch vs reference"

    print("KERNEL_OK")
</pallas_src>

<mosaic_0001>
module attributes {stable_mosaic.version = 11 : i64} {
  func.func @_coeffs_linear_kernel(%arg0: i32, %arg1: i32, %arg2: i32, %arg3: memref<8x128xf32, #tpu.memory_space<vmem>>, %arg4: memref<128x128xf32, #tpu.memory_space<vmem>>, %arg5: memref<8x128xf32, #tpu.memory_space<vmem>>, %arg6: memref<8x128xf32, #tpu.memory_space<vmem>>) attributes {dimension_semantics = [#tpu.dimension_semantics<parallel>, #tpu.dimension_semantics<parallel>, #tpu.dimension_semantics<arbitrary>], iteration_bounds = array<i64: 1, 1, 1>, scalar_prefetch = 0 : i64, scratch_operands = 1 : i64, tpu.core_type = #tpu.core_type<tc>, window_params = [{transform_indices = @transform_0, window_bounds = array<i64: 8, 128>}, {transform_indices = @transform_1, window_bounds = array<i64: 128, 128>}, {transform_indices = @transform_2, window_bounds = array<i64: 8, 128>}]} {
    %c0_i32 = arith.constant 0 : i32
    %0 = arith.cmpi eq, %arg2, %c0_i32 : i32
    %1 = arith.extui %0 : i1 to i32
    %c0_i32_0 = arith.constant 0 : i32
    %2 = arith.cmpi ne, %1, %c0_i32_0 : i32
    scf.if %2 {
      %cst_10 = arith.constant 0.000000e+00 : f32
      %12 = vector.broadcast %cst_10 : f32 to vector<8x128xf32>
      %c0_11 = arith.constant 0 : index
      %c0_12 = arith.constant 0 : index
      %13 = vector.load %arg6[%c0_11, %c0_12] : memref<8x128xf32, #tpu.memory_space<vmem>>, vector<8x128xf32>
      tpu.vector_store %arg6[%c0_11, %c0_12], %12 {strides = array<i32>} : memref<8x128xf32, #tpu.memory_space<vmem>>, vector<8x128xf32>,
    } else {
    }
    %c0 = arith.constant 0 : index
    %c0_1 = arith.constant 0 : index
    %3 = vector.load %arg6[%c0, %c0_1] : memref<8x128xf32, #tpu.memory_space<vmem>>, vector<8x128xf32>
    %c0_2 = arith.constant 0 : index
    %c0_3 = arith.constant 0 : index
    %4 = vector.load %arg3[%c0_2, %c0_3] : memref<8x128xf32, #tpu.memory_space<vmem>>, vector<8x128xf32>
    %c0_4 = arith.constant 0 : index
    %c0_5 = arith.constant 0 : index
    %5 = vector.load %arg4[%c0_4, %c0_5] : memref<128x128xf32, #tpu.memory_space<vmem>>, vector<128x128xf32>
    %cst = arith.constant dense<0.000000e+00> : vector<8x128xf32>
    %6 = tpu.matmul %4, %5, %cst {dimension_numbers = #tpu.dot_dimension_numbers<[1], [1], [0], [0], [0, 0, 1, 0], [], []>} : vector<8x128xf32>, vector<128x128xf32>, vector<8x128xf32> -> vector<8x128xf32>
    %7 = arith.addf %3, %6 : vector<8x128xf32>
    %c0_6 = arith.constant 0 : index
    %c0_7 = arith.constant 0 : index
    %8 = vector.load %arg6[%c0_6, %c0_7] : memref<8x128xf32, #tpu.memory_space<vmem>>, vector<8x128xf32>
    tpu.vector_store %arg6[%c0_6, %c0_7], %7 {strides = array<i32>} : memref<8x128xf32, #tpu.memory_space<vmem>>, vector<8x128xf32>,
    %c0_i32_8 = arith.constant 0 : i32
    %9 = arith.cmpi eq, %arg2, %c0_i32_8 : i32
    %10 = arith.extui %9 : i1 to i32
    %c0_i32_9 = arith.constant 0 : i32
    %11 = arith.cmpi ne, %10, %c0_i32_9 : i32
    scf.if %11 {
      %c0_10 = arith.constant 0 : index
      %c0_11 = arith.constant 0 : index
      %12 = vector.load %arg6[%c0_10, %c0_11] : memref<8x128xf32, #tpu.memory_space<vmem>>, vector<8x128xf32>
      %c0_12 = arith.constant 0 : index
      %c0_13 = arith.constant 0 : index
      %13 = vector.load %arg5[%c0_12, %c0_13] : memref<8x128xf32, #tpu.memory_space<vmem>>, vector<8x128xf32>
      tpu.vector_store %arg5[%c0_12, %c0_13], %12 {strides = array<i32>} : memref<8x128xf32, #tpu.memory_space<vmem>>, vector<8x128xf32>,
    } else {
    }
    return
  }
  func.func @transform_0(%arg0: i32, %arg1: i32, %arg2: i32) -> (i32, i32) {
    %c0_i32 = arith.constant 0 : i32
    return %arg0, %arg2 : i32, i32
  }
  func.func @transform_1(%arg0: i32, %arg1: i32, %arg2: i32) -> (i32, i32) {
    %c0_i32 = arith.constant 0 : i32
    return %arg1, %arg2 : i32, i32
  }
  func.func @transform_2(%arg0: i32, %arg1: i32, %arg2: i32) -> (i32, i32) {
    %c0_i32 = arith.constant 0 : i32
    return %arg0, %arg1 : i32, i32
  }
}

</mosaic_0001>

<bundles_post_ra>
// kernel: tpu_custom_call.1
= control target key start
LH: loop header
LB: loop body
LE: loop exit
PB: predicated region body
PF: predicated region fallthrough
CT: control target
= control target key end

     0   :  { %7 = vsyncpa [#allocation4], 0  ;;  %s310_s0 = inlined_call_operand.hbm [shape: f32[8,128], index: 0, kind: input, shape index: {}]   ;;  %s311_s1 = inlined_call_operand.hbm [shape: f32[128,128], index: 1, kind: input, shape index: {}]   ;;  %s312_s2 = inlined_call_operand.hbm [shape: f32[8,128], index: 2, kind: output, shape index: {}]  }
   0x1   :  { %8 = vsyncpa [#allocation7], 0 }
   0x2   :  { %9 = vsyncpa [#allocation5], 0  ;;  %s279_s9 = smov [#allocation3]   ;;  %s280_s11 = smov [#allocation6]  }
   0x3   :  { %s16_s10 = sshll.u32 %s279_s9, 4  ;;  %s25_s12 = sshll.u32 %s280_s11, 4  ;;  %s17_s10 = int_to_ptr.vmem [resolvable:$true] %s16_s10  ;;  %s26_s12 = int_to_ptr.vmem [resolvable:$true] %s25_s12 }
   0x4   :  { %s221_s13 = scalar_lea.vmem %s17_s10, 128  ;;  %p226_p1 = scmp.lt.s32.totalorder %s17_s10, %s17_s10 }
   0x5   :  { %p222_p0 = scmp.ne.s32.totalorder %s17_s10, %s221_s13  ;;  %p227_p2 = scmp.lt.s32.totalorder %s221_s13, %s221_s13 }
   0x7   :  { %p228_p3 = por %p227_p2, %p226_p1 }
   0x9   :  { %p229_p4 = pnand %p228_p3, %p222_p0 }
   0xb   :  { %232 = shalt.err (!%p229_p4)
}
   0xc   :  { %19 = dma.hbm_to_vmem [thread:$0]  %s310_s0, 128, %s17_s10, [#allocation4]  }
   0xd   :  { %s241_s16 = scalar_lea.vmem %s26_s12, 2048  ;;  %p246_p6 = scmp.lt.s32.totalorder %s26_s12, %s26_s12 }
   0xe   :  { %p242_p5 = scmp.ne.s32.totalorder %s26_s12, %s241_s16  ;;  %p247_p7 = scmp.lt.s32.totalorder %s241_s16, %s241_s16 }
  0x10   :  { %p248_p8 = por %p247_p7, %p246_p6 }
  0x12   :  { %p249_p9 = pnand %p248_p8, %p242_p5 }
  0x14   :  { %252 = shalt.err (!%p249_p9)
}
  0x15   :  { %s281_s17 = smov 128   ;;  %s282_s18 = smov 8  }
  0x16   :  { %31 = dma.hbm_to_vmem [thread:$0]  %s311_s1, 2048, %s26_s12, [#allocation7], %s281_s17, %s281_s17, %s282_s18  }
  0x17   :  { %273 = dma.done.wait [#allocation4], 128  }
  0x18   :  { %274 = vsyncadd [#allocation4], 4294967168 }
  0x19   :  { %275 = dma.done.wait [#allocation7], 2048  }
  0x1a   :  { %276 = vsyncadd [#allocation7], 4294965248  ;;  %v283_v0 = vmov 0.0   ;;  %vm284_vm0 = vmmov 0   ;;  %v60_v1 = vld [vmem:[#allocation6 + $0x78] sm:$0xff]  ;;  %v59_v2 = vld [vmem:[#allocation6 + $0x70] sm:$0xff] }
  0x1b   :  { %171 = vmatprep.subr.mxu0 %v283_v0  ;;  %203 = vmatprep.mubr.msk.f32.mxu0 %vm284_vm0, %v283_v0  ;;  %v58_v3 = vld [vmem:[#allocation6 + $0x68] sm:$0xff]  ;;  %v57_v4 = vld [vmem:[#allocation6 + $0x60] sm:$0xff]  ;;  %v56_v5 = vld [vmem:[#allocation6 + $0x58] sm:$0xff]  ;;  %s285_s0 = smov [#allocation8]  }
  0x1c   :  { %172 = vmatpush3.xpose.msra.mxu0 %v60_v1  ;;  %v55_v6 = vld [vmem:[#allocation6 + $0x50] sm:$0xff]  ;;  %v54_v7 = vld [vmem:[#allocation6 + $0x48] sm:$0xff]  ;;  %v53_v8 = vld [vmem:[#allocation6 + $0x40] sm:$0xff]  ;;  %s144_s1 = sshll.u32 %s285_s0, 4  ;;  %s145_s1 = int_to_ptr.vmem [resolvable:$true] %s144_s1 }
  0x1d   :  { %173 = vmatprep.subr.mxu0 %v283_v0  ;;  %v52_v9 = vld [vmem:[#allocation6 + $0x38] sm:$0xff]  ;;  %v51_v10 = vld [vmem:[#allocation6 + $0x30] sm:$0xff]  ;;  %v50_v11 = vld [vmem:[#allocation6 + $0x28] sm:$0xff]  ;;  %s253_s21 = scalar_lea.vmem %s145_s1, 128  ;;  %p258_p11 = scmp.lt.s32.totalorder %s145_s1, %s145_s1 }
  0x1e   :  { %v49_v12 = vld [vmem:[#allocation6 + $0x20] sm:$0xff]  ;;  %v48_v13 = vld [vmem:[#allocation6 + $0x18] sm:$0xff]  ;;  %v47_v14 = vld [vmem:[#allocation6 + $0x10] sm:$0xff]  ;;  %p254_p10 = scmp.ne.s32.totalorder %s145_s1, %s253_s21  ;;  %p259_p12 = scmp.lt.s32.totalorder %s253_s21, %s253_s21 }
  0x1f   :  { %v46_v15 = vld [vmem:[#allocation6 + $0x8] sm:$0xff]  ;;  %v45_v16 = vld [vmem:[#allocation6] sm:$0xff]  ;;  %v44_v17 = vld [vmem:[#allocation3] sm:$0xff] }
  0x20   :  { %174 = vmatpush3.xpose.msra.mxu0 %v59_v2  ;;  %p260_p13 = por %p259_p12, %p258_p11 }
  0x21   :  { %175 = vmatprep.subr.mxu0 %v283_v0 }
  0x22   :  { %p261_p0 = pnand %p260_p13, %p254_p10 }
  0x24   :  { %176 = vmatpush3.xpose.msra.mxu0 %v58_v3 }
  0x25   :  { %177 = vmatprep.subr.mxu0 %v283_v0 }
  0x28   :  { %178 = vmatpush3.xpose.msra.mxu0 %v57_v4 }
  0x29   :  { %179 = vmatprep.subr.mxu0 %v283_v0 }
  0x2c   :  { %180 = vmatpush3.xpose.msra.mxu0 %v56_v5 }
  0x2d   :  { %181 = vmatprep.subr.mxu0 %v283_v0 }
  0x30   :  { %182 = vmatpush3.xpose.msra.mxu0 %v55_v6 }
  0x31   :  { %183 = vmatprep.subr.mxu0 %v283_v0 }
  0x34   :  { %184 = vmatpush3.xpose.msra.mxu0 %v54_v7 }
  0x35   :  { %185 = vmatprep.subr.mxu0 %v283_v0 }
  0x38   :  { %186 = vmatpush3.xpose.msra.mxu0 %v53_v8 }
  0x39   :  { %187 = vmatprep.subr.mxu0 %v283_v0 }
  0x3c   :  { %188 = vmatpush3.xpose.msra.mxu0 %v52_v9 }
  0x3d   :  { %189 = vmatprep.subr.mxu0 %v283_v0 }
  0x40   :  { %190 = vmatpush3.xpose.msra.mxu0 %v51_v10 }
  0x41   :  { %191 = vmatprep.subr.mxu0 %v283_v0 }
  0x44   :  { %192 = vmatpush3.xpose.msra.mxu0 %v50_v11 }
  0x45   :  { %193 = vmatprep.subr.mxu0 %v283_v0 }
  0x48   :  { %194 = vmatpush3.xpose.msra.mxu0 %v49_v12 }
  0x49   :  { %195 = vmatprep.subr.mxu0 %v283_v0 }
  0x4c   :  { %196 = vmatpush3.xpose.msra.mxu0 %v48_v13 }
  0x4d   :  { %197 = vmatprep.subr.mxu0 %v283_v0 }
  0x50   :  { %198 = vmatpush3.xpose.msra.mxu0 %v47_v14 }
  0x51   :  { %199 = vmatprep.subr.mxu0 %v283_v0 }
  0x54   :  { %200 = vmatpush3.xpose.msra.mxu0 %v46_v15 }
  0x55   :  { %201 = vmatprep.subr.mxu0 %v283_v0 }
  0x58   :  { %202 = vmatpush3.xpose.msra.mxu0 %v45_v16 }
  0x5b   :  { %204 = vmatmul.mubr.f32.vlgmr.msra.gmra.mxu0 %v44_v17 }
 0x11b   :  { %v127_v18 = vpop.f32.mrf.mxu0 }
 0x11c   :  { %137 = vst [vmem:[#allocation8] sm:$0xff] %v127_v18 }
 0x11d   :  { %v205_v19 = vpop.f32.mrf.mxu0 }
 0x11e   :  { %264 = shalt.err (!%p261_p0)
}
 0x11f   :  { %147 = dma.vmem_to_hbm [thread:$0]  %s145_s1, 128, %s312_s2, [#allocation5]  }
 0x120   :  { %277 = dma.done.wait [#allocation5], 128  }
 0x121   :  { %278 = vsyncadd [#allocation5], 4294967168 }
 0x122   :  { %151 = vsyncpa [#allocation4], 1 }
 0x123   :  { %152 = vsyncpa [#allocation7], 1 }
 0x124   :  { %153 = vsyncpa [#allocation5], 1 }

</bundles_post_ra>
